<compile_context>
chip_gen: v7x
topology: tpu7x:2x2x1
jax: 0.10.0
libtpu: 0.0.40
codegen_flags: <defaults>
</compile_context>

<pallas_src>
import functools

import jax
import jax.numpy as jnp
from jax import lax
from jax.experimental import pallas as pl
from jax.experimental.pallas import tpu as pltpu


def _conv3x3_kernel(*refs, TH, W, C, Cout, guard, top_off, has_halo, use_slab):
    """One (batch, row-tile) grid step.

    refs (halo path)    : x_mid, x_top, x_bot, w, b, out, rows[, col]
    refs (no-halo path) : x_mid, w, b, out, rows[, col]

    x_mid : (1, C, TH*W)        tile rows, pixels flattened on lanes
    x_top : (1, C, halo_lanes)  lane block containing the row above the tile
    x_bot : (1, C, halo_lanes)  lane block containing the row below the tile
    w     : (Cout, 9*C) slab path | (9, Cout, C) per-tap path
    b     : (Cout, 1)
    out   : (1, Cout, TH*W)
    rows  : (C, guard + (TH+2)*W + 1) VMEM scratch
    col   : (9*C, TH*W) VMEM scratch (slab path only)
    """
    if has_halo:
        x_mid_ref, x_top_ref, x_bot_ref, w_ref, b_ref, o_ref, *scratch = refs
    else:
        x_mid_ref, w_ref, b_ref, o_ref, *scratch = refs
        x_top_ref = x_bot_ref = None
    rows_ref = scratch[0]
    col_ref = scratch[1] if use_slab else None

    THW = TH * W
    g = guard

    # ---- assemble TH + 2 flattened image rows into the row buffer -----------
    # Layout: [ guard(g) | top row (W) | tile rows (TH*W) | bottom row (W) | 1 ]
    # (g + W) % 128 == 0, so this big copy is a lane-aligned, unmasked store.
    rows_ref[:, g + W:g + W + THW] = x_mid_ref[0]

    if has_halo:
        t = pl.program_id(1)
        num_t = pl.num_programs(1)

        @pl.when(t > 0)
        def _():
            rows_ref[:, g:g + W] = x_top_ref[0, :, top_off:top_off + W]

        @pl.when(t == 0)                    # image top edge -> zero padding row
        def _():
            rows_ref[:, g:g + W] = jnp.zeros((C, W), rows_ref.dtype)

        @pl.when(t < num_t - 1)
        def _():
            rows_ref[:, g + W + THW:g + 2 * W + THW] = x_bot_ref[0, :, 0:W]

        @pl.when(t == num_t - 1)            # image bottom edge -> zero padding row
        def _():
            rows_ref[:, g + W + THW:g + 2 * W + THW] = jnp.zeros((C, W),
                                                                 rows_ref.dtype)
    else:
        # Single row tile per image: both halo rows are the zero padding rows.
        rows_ref[:, g:g + W] = jnp.zeros((C, W), rows_ref.dtype)
        rows_ref[:, g + W + THW:g + 2 * W + THW] = jnp.zeros((C, W),
                                                             rows_ref.dtype)

    # Guard lanes are intentionally never written: every tap position that can
    # read them is fully replaced by the left/right masks below (jnp.where is
    # safe against garbage / NaN in the unselected branch).

    # ---- left / right zero-padding masks (built once, broadcast over C) -----
    lane_col = lax.broadcasted_iota(jnp.int32, (1, THW), 1) % W
    not_left = lane_col != 0           # kx == 0 tap is padding at w == 0
    not_right = lane_col != W - 1      # kx == 2 tap is padding at w == W - 1

    def tap(ky, kx):
        s = (g - 1) + ky * W + kx
        v = rows_ref[:, s:s + THW]                      # (C, TH*W) lane window
        if kx == 0:
            v = jnp.where(not_left, v, jnp.zeros_like(v))
        elif kx == 2:
            v = jnp.where(not_right, v, jnp.zeros_like(v))
        return v

    if use_slab:
        # Tiny C: one deep MXU matmul over K = 9*C via a materialized im2col slab.
        for ky in range(3):
            for kx in range(3):
                k = ky * 3 + kx
                col_ref[k * C:(k + 1) * C, :] = tap(ky, kx)
        acc = jnp.dot(w_ref[...], col_ref[...],
                      preferred_element_type=jnp.float32)
    else:
        # Larger C: 9 accumulating matmuls straight out of the rows buffer
        # (no slab stores/loads, no 9*C*THW scratch).
        acc = None
        for ky in range(3):
            for kx in range(3):
                d = jnp.dot(w_ref[ky * 3 + kx], tap(ky, kx),
                            preferred_element_type=jnp.float32)
                acc = d if acc is None else acc + d

    acc = acc + b_ref[...].astype(jnp.float32)   # (Cout, 1) broadcast over lanes
    o_ref[0] = acc.astype(o_ref.dtype)


def _vmem_capacity_bytes():
    try:
        return int(pltpu.get_tpu_info().vmem_capacity_bytes)
    except Exception:
        return 64 * 2 ** 20        # conservative: v7x per-TensorCore VMEM


def _pick_row_tile(N, H, W, C, Cout, cbytes, obytes, use_slab, budget):
    """Largest row tile whose per-step VMEM footprint fits `budget` (lane-valid)."""
    if W > 128 and W % 128 != 0:
        # TODO(synk): wide images with W not a multiple of 128 are not row-tiled.
        return H
    # Per-lane footprint: mid input (dbl-buf) + rows buffer + output (dbl-buf)
    # + f32 accumulator (+ im2col slab on the slab path).
    per_lane = cbytes * 3 * C + obytes * 2 * Cout + 4 * Cout
    if use_slab:
        per_lane += cbytes * 9 * C
    fixed = cbytes * (4 * C * 128 + 9 * C * Cout + Cout) + 2 ** 16
    max_lanes = max(128, (budget - fixed) // per_lane)

    def lane_ok(th):
        return th == H or (th * W) % 128 == 0

    divisors = [th for th in range(1, H + 1) if H % th == 0 and lane_ok(th)]
    fitting = [th for th in divisors if th * W <= max_lanes]
    TH = max(fitting) if fitting else min(divisors)
    # v7x megacore: avoid a 1-step grid when a free split exists.
    if N * (H // TH) < 2:
        smaller = [th for th in fitting if th < TH]
        if smaller:
            TH = max(smaller)
    return TH


def basic_conv_forward(x_nchw, weight_oihw, bias, *, compute_dtype=jnp.float32,
                       row_tile=None, use_col_slab=None):
    """BasicConv.forward: 3x3 conv, padding=1, stride=1, + bias.  NCHW in/out."""
    N, C, H, W = x_nchw.shape
    Cout, Cin, KH, KW = weight_oihw.shape
    assert (Cin, KH, KW) == (C, 3, 3), "BasicConv uses a 3x3 kernel, padding=1"
    HW = H * W
    out_dtype = x_nchw.dtype
    cbytes = jnp.dtype(compute_dtype).itemsize
    obytes = jnp.dtype(out_dtype).itemsize

    if use_col_slab is None:
        use_col_slab = 9 * C <= 128    # tiny C: MXU contraction depth matters

    capacity = _vmem_capacity_bytes()
    budget = int(capacity * 0.42)      # ~27 MiB on v7x, ~54 MiB on v5e/v6e

    # ---- row tile ------------------------------------------------------------
    if row_tile is None:
        TH = _pick_row_tile(N, H, W, C, Cout, cbytes, obytes, use_col_slab, budget)
    else:
        TH = int(row_tile)
        if H % TH != 0:
            raise ValueError("row_tile must divide H")
        if TH != H and ((TH * W) % 128 != 0 or (W > 128 and W % 128 != 0)):
            raise ValueError("row tiling needs TH*W % 128 == 0 and "
                             "(W <= 128 or W % 128 == 0)")
    T = H // TH
    THW = TH * W
    has_halo = T > 1

    # Front guard so the tile-rows copy lands on a 128-lane boundary.
    guard = (-W) % 128 or 128
    rows_lanes = guard + (TH + 2) * W + 1

    # Halo rows are fetched as lane-aligned blocks of the flattened pixel axis.
    if has_halo:
        halo_lanes = W if W % 128 == 0 else 128
        top_off = halo_lanes - W
        kh = THW // halo_lanes
        n_hblocks = HW // halo_lanes
    else:
        halo_lanes = top_off = kh = n_hblocks = 0

    # ---- host-side glue: free reshapes only, no activation transposes --------
    x_flat = x_nchw.reshape(N, C, HW).astype(compute_dtype)
    if use_col_slab:        # (Cout, 9*C), tap-major columns
        w_arg = jnp.transpose(weight_oihw, (0, 2, 3, 1)).reshape(Cout, 9 * C)
    else:                   # (9, Cout, C), one aligned block per tap
        w_arg = jnp.transpose(weight_oihw, (2, 3, 0, 1)).reshape(9, Cout, C)
    w_arg = w_arg.astype(compute_dtype)
    b_col = bias.reshape(Cout, 1).astype(jnp.float32)

    kernel = functools.partial(
        _conv3x3_kernel, TH=TH, W=W, C=C, Cout=Cout, guard=guard,
        top_off=top_off, has_halo=has_halo, use_slab=use_col_slab)

    # ---- VMEM accounting: per-step footprint + generation-aware cap ----------
    block_bytes = (cbytes * (2 * C * THW + C * rows_lanes + 9 * C * Cout + Cout)
                   + obytes * 2 * Cout * THW
                   + 4 * Cout * THW)
    if use_col_slab:
        block_bytes += cbytes * 9 * C * THW
    if has_halo:
        block_bytes += cbytes * 4 * C * halo_lanes
    vmem_cap = min(capacity - 8 * 2 ** 20, 100 * 2 ** 20)   # ~56 MiB v7x, 100 MiB v5e/v6e
    vmem_limit = int(max(32 * 2 ** 20, min(vmem_cap, 2 * block_bytes + 2 ** 20)))

    cost = pl.CostEstimate(
        flops=2 * N * HW * 9 * C * Cout,
        transcendentals=0,
        bytes_accessed=((N * C * HW + 9 * C * Cout) * cbytes
                        + N * Cout * HW * obytes
                        + (N * T * 2 * C * halo_lanes * cbytes if has_halo else 0)),
    )

    mid_spec = pl.BlockSpec((1, C, THW), lambda n, t: (n, 0, t))
    w_spec = pl.BlockSpec(w_arg.shape, lambda n, t: (0,) * w_arg.ndim)
    b_spec = pl.BlockSpec((Cout, 1), lambda n, t: (0, 0))
    out_spec = pl.BlockSpec((1, Cout, THW), lambda n, t: (n, 0, t))
    scratch_shapes = [pltpu.VMEM((C, rows_lanes), compute_dtype)]
    if use_col_slab:
        scratch_shapes.append(pltpu.VMEM((9 * C, THW), compute_dtype))

    if has_halo:
        in_specs = [
            mid_spec,
            pl.BlockSpec((1, C, halo_lanes),
                         lambda n, t: (n, 0, jnp.maximum(t * kh - 1, 0))),
            pl.BlockSpec((1, C, halo_lanes),
                         lambda n, t: (n, 0, jnp.minimum((t + 1) * kh,
                                                         n_hblocks - 1))),
            w_spec, b_spec,
        ]
        operands = (x_flat, x_flat, x_flat, w_arg, b_col)
    else:
        # T == 1: no halo inputs at all (previously the input was streamed 3x).
        in_specs = [mid_spec, w_spec, b_spec]
        operands = (x_flat, w_arg, b_col)

    y_flat = pl.pallas_call(
        kernel,
        out_shape=jax.ShapeDtypeStruct((N, Cout, HW), out_dtype),
        grid_spec=pltpu.PrefetchScalarGridSpec(
            num_scalar_prefetch=0,
            grid=(N, T),
            in_specs=in_specs,
            out_specs=out_spec,
            scratch_shapes=scratch_shapes,
        ),
        compiler_params=pltpu.CompilerParams(
            dimension_semantics=("parallel", "parallel"),
            vmem_limit_bytes=vmem_limit),
        cost_estimate=cost,
    )(*operands)

    return y_flat.reshape(N, Cout, H, W)   # free reshape; already NCHW


def _reference_forward(x_nchw, weight_oihw, bias):
    """Pure-JAX reference (lax conv, f32) for correctness checking."""
    y = lax.conv_general_dilated(
        x_nchw, weight_oihw,
        window_strides=(1, 1),
        padding=((1, 1), (1, 1)),
        dimension_numbers=("NCHW", "OIHW", "NCHW"))
    return y + bias[None, :, None, None]


if __name__ == "__main__":
    key = jax.random.PRNGKey(0)
    N, C, H, W = 2, 4, 16, 16
    Cout = 8

    kx_, kw_, kb_ = jax.random.split(key, 3)
    x = jax.random.normal(kx_, (N, C, H, W), dtype=jnp.float32)

    # PyTorch default Conv2d init: U(-1/sqrt(fan_in), 1/sqrt(fan_in)).
    fan_in = C * 3 * 3
    bound = 1.0 / float(fan_in) ** 0.5
    w = jax.random.uniform(kw_, (Cout, C, 3, 3), jnp.float32, -bound, bound)
    b = jax.random.uniform(kb_, (Cout,), jnp.float32, -bound, bound)

    ref = _reference_forward(x, w, b)

    # Row-tiled slab path (grid = (N, 2)): halo rows + edge masking + im2col slab.
    out = jax.block_until_ready(basic_conv_forward(x, w, b, row_tile=8))
    assert out.shape == (N, Cout, H, W)
    assert jnp.allclose(out, ref, atol=5e-4, rtol=5e-4)

    # Row-tiled per-tap path (the large-C code path, forced here for coverage).
    out_taps = jax.block_until_ready(
        basic_conv_forward(x, w, b, row_tile=8, use_col_slab=False))
    assert jnp.allclose(out_taps, ref, atol=5e-4, rtol=5e-4)

    # Auto-tiled path: single tile per image -> halo-free variant.
    out_full = jax.block_until_ready(basic_conv_forward(x, w, b))
    assert jnp.allclose(out_full, ref, atol=5e-4, rtol=5e-4)

    # bf16 compute / f32 accumulation path.
    out_bf16 = jax.block_until_ready(
        basic_conv_forward(x, w, b, row_tile=8, compute_dtype=jnp.bfloat16))
    assert jnp.allclose(out_bf16, ref, atol=5e-2, rtol=5e-2)

    print("KERNEL_OK")
</pallas_src>

<mosaic_0001>
module attributes {stable_mosaic.version = 11 : i64} {
  func.func @_conv3x3_kernel(%arg0: i32, %arg1: i32, %arg2: memref<1x4x128xf32, #tpu.memory_space<vmem>>, %arg3: memref<1x4x128xf32, #tpu.memory_space<vmem>>, %arg4: memref<1x4x128xf32, #tpu.memory_space<vmem>>, %arg5: memref<8x36xf32, #tpu.memory_space<vmem>>, %arg6: memref<8x1xf32, #tpu.memory_space<vmem>>, %arg7: memref<1x8x128xf32, #tpu.memory_space<vmem>>, %arg8: memref<4x273xf32, #tpu.memory_space<vmem>>, %arg9: memref<36x128xf32, #tpu.memory_space<vmem>>) attributes {dimension_semantics = [#tpu.dimension_semantics<parallel>, #tpu.dimension_semantics<parallel>], iteration_bounds = array<i64: 2, 2>, scalar_prefetch = 0 : i64, scratch_operands = 2 : i64, tpu.core_type = #tpu.core_type<tc>, window_params = [{transform_indices = @transform_0, window_bounds = array<i64: 1, 4, 128>}, {transform_indices = @transform_1, window_bounds = array<i64: 1, 4, 128>}, {transform_indices = @transform_2, window_bounds = array<i64: 1, 4, 128>}, {pipeline_mode = #tpu.pipeline_mode<synchronous>, transform_indices = @transform_3, window_bounds = array<i64: 8, 36>}, {pipeline_mode = #tpu.pipeline_mode<synchronous>, transform_indices = @transform_4, window_bounds = array<i64: 8, 1>}, {transform_indices = @transform_5, window_bounds = array<i64: 1, 8, 128>}]} {
    %c0 = arith.constant 0 : index
    %c0_0 = arith.constant 0 : index
    %c0_1 = arith.constant 0 : index
    %0 = vector.load %arg2[%c0, %c0_0, %c0_1] : memref<1x4x128xf32, #tpu.memory_space<vmem>>, vector<1x4x128xf32>
    %1 = vector.shape_cast %0 : vector<1x4x128xf32> to vector<4x128xf32>
    %c0_2 = arith.constant 0 : index
    %c128 = arith.constant 128 : index
    %2 = vector.load %arg8[%c0_2, %c128] : memref<4x273xf32, #tpu.memory_space<vmem>>, vector<4x128xf32>
    tpu.vector_store %arg8[%c0_2, %c128], %1 {strides = array<i32>} : memref<4x273xf32, #tpu.memory_space<vmem>>, vector<4x128xf32>,
    %c0_i32 = arith.constant 0 : i32
    %3 = arith.cmpi sgt, %arg1, %c0_i32 : i32
    %4 = arith.extui %3 : i1 to i32
    %c0_i32_3 = arith.constant 0 : i32
    %5 = arith.cmpi ne, %4, %c0_i32_3 : i32
    scf.if %5 {
      %c0_50 = arith.constant 0 : index
      %c0_51 = arith.constant 0 : index
      %c112_52 = arith.constant 112 : index
      %87 = vector.load %arg3[%c0_50, %c0_51, %c112_52] : memref<1x4x128xf32, #tpu.memory_space<vmem>>, vector<1x4x16xf32>
      %88 = vector.shape_cast %87 : vector<1x4x16xf32> to vector<4x16xf32>
      %c0_53 = arith.constant 0 : index
      %c112_54 = arith.constant 112 : index
      %89 = vector.load %arg8[%c0_53, %c112_54] : memref<4x273xf32, #tpu.memory_space<vmem>>, vector<4x16xf32>
      tpu.vector_store %arg8[%c0_53, %c112_54], %88 {strides = array<i32>} : memref<4x273xf32, #tpu.memory_space<vmem>>, vector<4x16xf32>,
    } else {
    }
    %c0_i32_4 = arith.constant 0 : i32
    %6 = arith.cmpi eq, %arg1, %c0_i32_4 : i32
    %7 = arith.extui %6 : i1 to i32
    %c0_i32_5 = arith.constant 0 : i32
    %8 = arith.cmpi ne, %7, %c0_i32_5 : i32
    scf.if %8 {
      %cst_50 = arith.constant 0.000000e+00 : f32
      %87 = vector.broadcast %cst_50 : f32 to vector<4x16xf32>
      %c0_51 = arith.constant 0 : index
      %c112_52 = arith.constant 112 : index
      %88 = vector.load %arg8[%c0_51, %c112_52] : memref<4x273xf32, #tpu.memory_space<vmem>>, vector<4x16xf32>
      tpu.vector_store %arg8[%c0_51, %c112_52], %87 {strides = array<i32>} : memref<4x273xf32, #tpu.memory_space<vmem>>, vector<4x16xf32>,
    } else {
    }
    %c1_i32 = arith.constant 1 : i32
    %9 = arith.cmpi slt, %arg1, %c1_i32 : i32
    %10 = arith.extui %9 : i1 to i32
    %c0_i32_6 = arith.constant 0 : i32
    %11 = arith.cmpi ne, %10, %c0_i32_6 : i32
    scf.if %11 {
      %c0_50 = arith.constant 0 : index
      %c0_51 = arith.constant 0 : index
      %c0_52 = arith.constant 0 : index
      %87 = vector.load %arg4[%c0_50, %c0_51, %c0_52] : memref<1x4x128xf32, #tpu.memory_space<vmem>>, vector<1x4x16xf32>
      %88 = vector.shape_cast %87 : vector<1x4x16xf32> to vector<4x16xf32>
      %c0_53 = arith.constant 0 : index
      %c256 = arith.constant 256 : index
      %89 = vector.load %arg8[%c0_53, %c256] : memref<4x273xf32, #tpu.memory_space<vmem>>, vector<4x16xf32>
      tpu.vector_store %arg8[%c0_53, %c256], %88 {strides = array<i32>} : memref<4x273xf32, #tpu.memory_space<vmem>>, vector<4x16xf32>,
    } else {
    }
    %c1_i32_7 = arith.constant 1 : i32
    %12 = arith.cmpi eq, %arg1, %c1_i32_7 : i32
    %13 = arith.extui %12 : i1 to i32
    %c0_i32_8 = arith.constant 0 : i32
    %14 = arith.cmpi ne, %13, %c0_i32_8 : i32
    scf.if %14 {
      %cst_50 = arith.constant 0.000000e+00 : f32
      %87 = vector.broadcast %cst_50 : f32 to vector<4x16xf32>
      %c0_51 = arith.constant 0 : index
      %c256 = arith.constant 256 : index
      %88 = vector.load %arg8[%c0_51, %c256] : memref<4x273xf32, #tpu.memory_space<vmem>>, vector<4x16xf32>
      tpu.vector_store %arg8[%c0_51, %c256], %87 {strides = array<i32>} : memref<4x273xf32, #tpu.memory_space<vmem>>, vector<4x16xf32>,
    } else {
    }
    %15 = tpu.iota {dimensions = array<i32: 1>} : vector<1x128xi32>
    %c16_i32 = arith.constant 16 : i32
    %c0_i32_9 = arith.constant 0 : i32
    %16 = arith.cmpi eq, %c16_i32, %c0_i32_9 : i32
    %c1_i32_10 = arith.constant 1 : i32
    %17 = arith.select %16, %c1_i32_10, %c16_i32 : i32
    %18 = vector.broadcast %17 : i32 to vector<1x128xi32>
    %19 = arith.remsi %15, %18 : vector<1x128xi32>
    %c0_i32_11 = arith.constant 0 : i32
    %20 = vector.broadcast %c0_i32_11 : i32 to vector<1x128xi32>
    %21 = arith.cmpi ne, %19, %20 : vector<1x128xi32>
    %c0_i32_12 = arith.constant 0 : i32
    %22 = vector.broadcast %c0_i32_12 : i32 to vector<1x128xi32>
    %23 = arith.cmpi slt, %19, %22 : vector<1x128xi32>
    %c0_i32_13 = arith.constant 0 : i32
    %24 = arith.cmpi slt, %17, %c0_i32_13 : i32
    %25 = vector.broadcast %24 : i1 to vector<1x128xi1>
    %26 = vector.broadcast %25 : vector<1x128xi1> to vector<1x128xi1>
    %27 = arith.xori %23, %26 : vector<1x128xi1>
    %28 = arith.andi %27, %21 : vector<1x128xi1>
    %29 = vector.broadcast %17 : i32 to vector<1x128xi32>
    %30 = arith.addi %19, %29 : vector<1x128xi32>
    %31 = arith.select %28, %30, %19 : vector<1x128xi1>, vector<1x128xi32>
    %c0_i32_14 = arith.constant 0 : i32
    %32 = vector.broadcast %c0_i32_14 : i32 to vector<1x128xi32>
    %33 = arith.cmpi ne, %31, %32 : vector<1x128xi32>
    %c15_i32 = arith.constant 15 : i32
    %34 = vector.broadcast %c15_i32 : i32 to vector<1x128xi32>
    %35 = arith.cmpi ne, %31, %34 : vector<1x128xi32>
    %c0_15 = arith.constant 0 : index
    %c111 = arith.constant 111 : index
    %36 = vector.load %arg8[%c0_15, %c111] : memref<4x273xf32, #tpu.memory_space<vmem>>, vector<4x128xf32>
    %cst = arith.constant 0.000000e+00 : f32
    %37 = vector.broadcast %cst : f32 to vector<4x128xf32>
    %38 = vector.shape_cast %33 : vector<1x128xi1> to vector<1x128xi1>
    %39 = vector.broadcast %38 : vector<1x128xi1> to vector<4x128xi1>
    %40 = arith.select %39, %36, %37 : vector<4x128xi1>, vector<4x128xf32>
    %c0_16 = arith.constant 0 : index
    %c0_17 = arith.constant 0 : index
    %41 = vector.load %arg9[%c0_16, %c0_17] : memref<36x128xf32, #tpu.memory_space<vmem>>, vector<4x128xf32>
    tpu.vector_store %arg9[%c0_16, %c0_17], %40 {strides = array<i32>} : memref<36x128xf32, #tpu.memory_space<vmem>>, vector<4x128xf32>,
    %c0_18 = arith.constant 0 : index
    %c112 = arith.constant 112 : index
    %42 = vector.load %arg8[%c0_18, %c112] : memref<4x273xf32, #tpu.memory_space<vmem>>, vector<4x128xf32>
    %c4 = arith.constant 4 : index
    %c0_19 = arith.constant 0 : index
    %43 = vector.load %arg9[%c4, %c0_19] : memref<36x128xf32, #tpu.memory_space<vmem>>, vector<4x128xf32>
    tpu.vector_store %arg9[%c4, %c0_19], %42 {strides = array<i32>} : memref<36x128xf32, #tpu.memory_space<vmem>>, vector<4x128xf32>,
    %c0_20 = arith.constant 0 : index
    %c113 = arith.constant 113 : index
    %44 = vector.load %arg8[%c0_20, %c113] : memref<4x273xf32, #tpu.memory_space<vmem>>, vector<4x128xf32>
    %cst_21 = arith.constant 0.000000e+00 : f32
    %45 = vector.broadcast %cst_21 : f32 to vector<4x128xf32>
    %46 = vector.shape_cast %35 : vector<1x128xi1> to vector<1x128xi1>
    %47 = vector.broadcast %46 : vector<1x128xi1> to vector<4x128xi1>
    %48 = arith.select %47, %44, %45 : vector<4x128xi1>, vector<4x128xf32>
    %c8 = arith.constant 8 : index
    %c0_22 = arith.constant 0 : index
    %49 = vector.load %arg9[%c8, %c0_22] : memref<36x128xf32, #tpu.memory_space<vmem>>, vector<4x128xf32>
    tpu.vector_store %arg9[%c8, %c0_22], %48 {strides = array<i32>} : memref<36x128xf32, #tpu.memory_space<vmem>>, vector<4x128xf32>,
    %c0_23 = arith.constant 0 : index
    %c127 = arith.constant 127 : index
    %50 = vector.load %arg8[%c0_23, %c127] : memref<4x273xf32, #tpu.memory_space<vmem>>, vector<4x128xf32>
    %cst_24 = arith.constant 0.000000e+00 : f32
    %51 = vector.broadcast %cst_24 : f32 to vector<4x128xf32>
    %52 = vector.shape_cast %33 : vector<1x128xi1> to vector<1x128xi1>
    %53 = vector.broadcast %52 : vector<1x128xi1> to vector<4x128xi1>
    %54 = arith.select %53, %50, %51 : vector<4x128xi1>, vector<4x128xf32>
    %c12 = arith.constant 12 : index
    %c0_25 = arith.constant 0 : index
    %55 = vector.load %arg9[%c12, %c0_25] : memref<36x128xf32, #tpu.memory_space<vmem>>, vector<4x128xf32>
    tpu.vector_store %arg9[%c12, %c0_25], %54 {strides = array<i32>} : memref<36x128xf32, #tpu.memory_space<vmem>>, vector<4x128xf32>,
    %c0_26 = arith.constant 0 : index
    %c128_27 = arith.constant 128 : index
    %56 = vector.load %arg8[%c0_26, %c128_27] : memref<4x273xf32, #tpu.memory_space<vmem>>, vector<4x128xf32>
    %c16 = arith.constant 16 : index
    %c0_28 = arith.constant 0 : index
    %57 = vector.load %arg9[%c16, %c0_28] : memref<36x128xf32, #tpu.memory_space<vmem>>, vector<4x128xf32>
    tpu.vector_store %arg9[%c16, %c0_28], %56 {strides = array<i32>} : memref<36x128xf32, #tpu.memory_space<vmem>>, vector<4x128xf32>,
    %c0_29 = arith.constant 0 : index
    %c129 = arith.constant 129 : index
    %58 = vector.load %arg8[%c0_29, %c129] : memref<4x273xf32, #tpu.memory_space<vmem>>, vector<4x128xf32>
    %cst_30 = arith.constant 0.000000e+00 : f32
    %59 = vector.broadcast %cst_30 : f32 to vector<4x128xf32>
    %60 = vector.shape_cast %35 : vector<1x128xi1> to vector<1x128xi1>
    %61 = vector.broadcast %60 : vector<1x128xi1> to vector<4x128xi1>
    %62 = arith.select %61, %58, %59 : vector<4x128xi1>, vector<4x128xf32>
    %c20 = arith.constant 20 : index
    %c0_31 = arith.constant 0 : index
    %63 = vector.load %arg9[%c20, %c0_31] : memref<36x128xf32, #tpu.memory_space<vmem>>, vector<4x128xf32>
    tpu.vector_store %arg9[%c20, %c0_31], %62 {strides = array<i32>} : memref<36x128xf32, #tpu.memory_space<vmem>>, vector<4x128xf32>,
    %c0_32 = arith.constant 0 : index
    %c143 = arith.constant 143 : index
    %64 = vector.load %arg8[%c0_32, %c143] : memref<4x273xf32, #tpu.memory_space<vmem>>, vector<4x128xf32>
    %cst_33 = arith.constant 0.000000e+00 : f32
    %65 = vector.broadcast %cst_33 : f32 to vector<4x128xf32>
    %66 = vector.shape_cast %33 : vector<1x128xi1> to vector<1x128xi1>
    %67 = vector.broadcast %66 : vector<1x128xi1> to vector<4x128xi1>
    %68 = arith.select %67, %64, %65 : vector<4x128xi1>, vector<4x128xf32>
    %c24 = arith.constant 24 : index
    %c0_34 = arith.constant 0 : index
    %69 = vector.load %arg9[%c24, %c0_34] : memref<36x128xf32, #tpu.memory_space<vmem>>, vector<4x128xf32>
    tpu.vector_store %arg9[%c24, %c0_34], %68 {strides = array<i32>} : memref<36x128xf32, #tpu.memory_space<vmem>>, vector<4x128xf32>,
    %c0_35 = arith.constant 0 : index
    %c144 = arith.constant 144 : index
    %70 = vector.load %arg8[%c0_35, %c144] : memref<4x273xf32, #tpu.memory_space<vmem>>, vector<4x128xf32>
    %c28 = arith.constant 28 : index
    %c0_36 = arith.constant 0 : index
    %71 = vector.load %arg9[%c28, %c0_36] : memref<36x128xf32, #tpu.memory_space<vmem>>, vector<4x128xf32>
    tpu.vector_store %arg9[%c28, %c0_36], %70 {strides = array<i32>} : memref<36x128xf32, #tpu.memory_space<vmem>>, vector<4x128xf32>,
    %c0_37 = arith.constant 0 : index
    %c145 = arith.constant 145 : index
    %72 = vector.load %arg8[%c0_37, %c145] : memref<4x273xf32, #tpu.memory_space<vmem>>, vector<4x128xf32>
    %cst_38 = arith.constant 0.000000e+00 : f32
    %73 = vector.broadcast %cst_38 : f32 to vector<4x128xf32>
    %74 = vector.shape_cast %35 : vector<1x128xi1> to vector<1x128xi1>
    %75 = vector.broadcast %74 : vector<1x128xi1> to vector<4x128xi1>
    %76 = arith.select %75, %72, %73 : vector<4x128xi1>, vector<4x128xf32>
    %c32 = arith.constant 32 : index
    %c0_39 = arith.constant 0 : index
    %77 = vector.load %arg9[%c32, %c0_39] : memref<36x128xf32, #tpu.memory_space<vmem>>, vector<4x128xf32>
    tpu.vector_store %arg9[%c32, %c0_39], %76 {strides = array<i32>} : memref<36x128xf32, #tpu.memory_space<vmem>>, vector<4x128xf32>,
    %c0_40 = arith.constant 0 : index
    %c0_41 = arith.constant 0 : index
    %78 = vector.load %arg5[%c0_40, %c0_41] : memref<8x36xf32, #tpu.memory_space<vmem>>, vector<8x36xf32>
    %c0_42 = arith.constant 0 : index
    %c0_43 = arith.constant 0 : index
    %79 = vector.load %arg9[%c0_42, %c0_43] : memref<36x128xf32, #tpu.memory_space<vmem>>, vector<36x128xf32>
    %cst_44 = arith.constant dense<0.000000e+00> : vector<8x128xf32>
    %80 = tpu.matmul %78, %79, %cst_44 {dimension_numbers = #tpu.dot_dimension_numbers<[1], [0], [0], [1], [0, 0, 1, 1], [], []>} : vector<8x36xf32>, vector<36x128xf32>, vector<8x128xf32> -> vector<8x128xf32>
    %c0_45 = arith.constant 0 : index
    %c0_46 = arith.constant 0 : index
    %81 = vector.load %arg6[%c0_45, %c0_46] : memref<8x1xf32, #tpu.memory_space<vmem>>, vector<8x1xf32>
    %82 = vector.broadcast %81 : vector<8x1xf32> to vector<8x128xf32>
    %83 = arith.addf %80, %82 : vector<8x128xf32>
    %c0_47 = arith.constant 0 : index
    %c0_48 = arith.constant 0 : index
    %c0_49 = arith.constant 0 : index
    %84 = vector.load %arg7[%c0_47, %c0_48, %c0_49] : memref<1x8x128xf32, #tpu.memory_space<vmem>>, vector<1x8x128xf32>
    %85 = vector.shape_cast %84 : vector<1x8x128xf32> to vector<8x128xf32>
    %86 = vector.shape_cast %83 : vector<8x128xf32> to vector<1x8x128xf32>
    tpu.vector_store %arg7[%c0_47, %c0_48, %c0_49], %86 {strides = array<i32>} : memref<1x8x128xf32, #tpu.memory_space<vmem>>, vector<1x8x128xf32>,
    return
  }
  func.func @transform_0(%arg0: i32, %arg1: i32) -> (i32, i32, i32) {
    %c0_i32 = arith.constant 0 : i32
    %c0_i32_0 = arith.constant 0 : i32
    return %arg0, %c0_i32, %arg1 : i32, i32, i32
  }
  func.func @transform_1(%arg0: i32, %arg1: i32) -> (i32, i32, i32) {
    %c1_i32 = arith.constant 1 : i32
    %0 = arith.muli %arg1, %c1_i32 : i32
    %c1_i32_0 = arith.constant 1 : i32
    %1 = arith.subi %0, %c1_i32_0 : i32
    %c0_i32 = arith.constant 0 : i32
    %2 = arith.maxsi %1, %c0_i32 : i32
    %c0_i32_1 = arith.constant 0 : i32
    %c0_i32_2 = arith.constant 0 : i32
    return %arg0, %c0_i32_1, %2 : i32, i32, i32
  }
  func.func @transform_2(%arg0: i32, %arg1: i32) -> (i32, i32, i32) {
    %c1_i32 = arith.constant 1 : i32
    %0 = arith.addi %arg1, %c1_i32 : i32
    %c1_i32_0 = arith.constant 1 : i32
    %1 = arith.muli %0, %c1_i32_0 : i32
    %c1_i32_1 = arith.constant 1 : i32
    %2 = arith.minsi %1, %c1_i32_1 : i32
    %c0_i32 = arith.constant 0 : i32
    %c0_i32_2 = arith.constant 0 : i32
    return %arg0, %c0_i32, %2 : i32, i32, i32
  }
  func.func @transform_3(%arg0: i32, %arg1: i32) -> (i32, i32) {
    %c0_i32 = arith.constant 0 : i32
    %c0_i32_0 = arith.constant 0 : i32
    %c0_i32_1 = arith.constant 0 : i32
    return %c0_i32, %c0_i32_0 : i32, i32
  }
  func.func @transform_4(%arg0: i32, %arg1: i32) -> (i32, i32) {
    %c0_i32 = arith.constant 0 : i32
    %c0_i32_0 = arith.constant 0 : i32
    %c0_i32_1 = arith.constant 0 : i32
    return %c0_i32, %c0_i32_0 : i32, i32
  }
  func.func @transform_5(%arg0: i32, %arg1: i32) -> (i32, i32, i32) {
    %c0_i32 = arith.constant 0 : i32
    %c0_i32_0 = arith.constant 0 : i32
    return %arg0, %c0_i32, %arg1 : i32, i32, i32
  }
}

</mosaic_0001>

<bundles_post_ra>
// kernel: tpu_custom_call.1
= control target key start
LH: loop header
LB: loop body
LE: loop exit
PB: predicated region body
PF: predicated region fallthrough
CT: control target
= control target key end

     0   :  { %s1597_s0 = inlined_call_operand.hbm [shape: f32[2,4,256], index: 0, kind: input, shape index: {}]   ;;  %s1598_s1 = inlined_call_operand.hbm [shape: f32[2,4,256], index: 1, kind: input, shape index: {}]   ;;  %s1599_s2 = inlined_call_operand.vmem [shape: f32[2,4,256], index: 2, kind: input, shape index: {}]   ;;  %s1600_s3 = inlined_call_operand.hbm [shape: f32[8,36], index: 3, kind: input, shape index: {}]   ;;  %s1601_s4 = inlined_call_operand.vmem [shape: f32[8,1], index: 4, kind: input, shape index: {}]   ;;  %s1602_s5 = inlined_call_operand.hbm [shape: f32[2,8,256], index: 5, kind: output, shape index: {}]  }
   0x1   :  { %1614 = sst [smem:[#allocation19_spill]] %s1597_s0 }
   0x2   :  { %1615 = sst [smem:[#allocation20_spill]] %s1600_s3 }
   0x3   :  { %1616 = sst [smem:[#allocation21_spill]] %s1601_s4 }
   0x4   :  { %1617 = sst [smem:[#allocation22_spill]] %s1602_s5 }
   0x5   :  { %10 = vsyncpa [#allocation5], 0 }
   0x6   :  { %12 = vsyncpa [#allocation5 + $0x1], 0 }
   0x7   :  { %13 = vsyncpa [#allocation8], 0 }
   0x8   :  { %15 = vsyncpa [#allocation8 + $0x1], 0 }
   0x9   :  { %16 = vsyncpa [#allocation6], 0 }
   0xa   :  { %18 = vsyncpa [#allocation6 + $0x1], 0  ;;  %s1227_s18 = smov 0   ;;  %s1229_s19 = smov 0  }
   0xb   :  { %s1231_s20 = smov 0   ;;  %s1233_s21 = smov 0  }
   0xc   :  { %s1235_s22 = smov 0   ;;  %s1237_s23 = smov 0  }
   0xd   :  { %s1239_s24 = smov 0   ;;  %s1241_s25 = smov 0  }
   0xe   :  { %s1243_s26 = smov 0   ;;  %s1245_s27 = smov 0  }
   0xf   :  { %s1247_s28 = smov 0  }
  0x10 LB: > { %1618 = sst [smem:[#allocation15_spill]] %s1149_s21  ;;  %s1281_s29 = sadd.s32 4294967295, %s1177_s28   ;;  %s1177_s28 = sphi %s1247_s28, %s24_s28   ;;  %s1173_s27 = sphi %s1245_s27, %s1662_s27   ;;  %s1169_s26 = sphi %s1243_s26, %s1661_s26   ;;  %s1165_s25 = sphi %s1241_s25, %s1660_s25   ;;  %s1161_s24 = sphi %s1239_s24, %s1659_s24   ;;  %s1157_s23 = sphi %s1237_s23, %s1658_s23   ;;  %s1153_s22 = sphi %s1235_s22, %s1657_s22   ;;  %s1149_s21 = sphi %s1233_s21, %s1656_s21   ;;  %s1145_s20 = sphi %s1231_s20, %s1655_s20   ;;  %s1141_s19 = sphi %s1229_s19, %s1654_s19   ;;  %s1137_s18 = sphi %s1227_s18, %s1653_s18  }
  0x11   : > { %s764_s30 = sadd.s32 4294967294, %s1177_s28   ;;  %p58_p0 = scmp.ne.s32.totalorder %s1153_s22, %s1149_s21 }
  0x12   : > { %p1604_p1 = scmp.eq.s32.totalorder %s1281_s29, 0  ;;  %p92_p2 = scmp.ne.s32.totalorder %s1141_s19, %s1137_s18 }
  0x13   : > { %p200_p5 = scmp.eq.s32.totalorder %s764_s30, 3  ;;  %p767_p7 = scmp.ge.s32.totalorder %s1177_s28, 1 }
  0x14   : > { %p1291_p4 = por %p1604_p1, %p58_p0  ;;  %p1297_p6 = por %p92_p2, %p1604_p1 }
  0x15   : > { %p1302_p8 = por %p200_p5, %p58_p0  ;;  %p207_p9 = scmp.lt.s32.totalorder %s1177_s28, 5 }
  0x16   : > { %s1619_s6 = scalar_select %p1291_p4, 1, 0 }
  0x17   : > { %s1620_s7 = scalar_select %p1297_p6, 1, 0 }
  0x18   : > { %s1621_s8 = scalar_select %p1302_p8, 1, 0 }
  0x19   : > { %p1307_p10 = pnand %p767_p7, %p207_p9  ;;  %s1179_s10 = smov [#allocation9]  }
  0x1a   : > { %1622 = sst [smem:[#allocation16_spill]] %s1621_s8  ;;  %s220_s11 = sshll.u32 %s1179_s10, 4  ;;  %s221_s11 = int_to_ptr.vmem [resolvable:$true] %s220_s11 }
  0x1b   : > { %s1623_s9 = scalar_select %p1307_p10, 1, 0 }
  0x1c   : > { %p833_p11 = pneg %p1307_p10  ;;  %s33_s13 = sadd.s32 1, %s1169_s26 }
  0x1d   : > { %s1625_s3 = sld [smem:[#allocation20_spill]] }
  0x1e   : > { %p1315_p12 = pnand %p833_p11, %p1604_p1 }
  0x20   : > { %p960_p0 = pneg %p1315_p12 }
  0x23   : > { %s958_s16 = scalar_lea.hbm %s1625_s3, 128 }
  0x24   : > { %p959_p13 = scmp.ne.s32.totalorder %s1625_s3, %s958_s16  ;;  %p965_p7 = scmp.lt.u32.totalorder %s958_s16, %s1625_s3 }
  0x26   : > { %p961_p2 = pnand %p960_p0, %p959_p13 }
  0x28   : > { %p962_p5 = pneg %p961_p2 }
  0x2a   : > { %p967_p9 = pnand %p965_p7, %p962_p5 }
  0x2c   : > { %970 = shalt.err (!%p967_p9)
}
  0x2d   : > { %s971_s8 = scalar_lea.vmem %s221_s11, 128  ;;  %p979_p8 = scmp.lt.s32.totalorder %s221_s11, %s221_s11 }
  0x2e   : > { %p972_p11 = scmp.ne.s32.totalorder %s221_s11, %s971_s8  ;;  %p980_p6 = scmp.lt.s32.totalorder %s971_s8, %s971_s8 }
  0x30   : > { %p974_p1 = pnand %p972_p11, %p960_p0  ;;  %p981_p4 = por %p980_p6, %p979_p8 }
  0x32   : > { %p975_p3 = pneg %p974_p1 }
  0x34   : > { %p982_p10 = pnand %p981_p4, %p975_p3 }
  0x36   : > { %985 = shalt.err (!%p982_p10)
}
  0x37   : > { %836 = dma.hbm_to_vmem [thread:$0]  (!%p1315_p12), %s1625_s3, 128, %s221_s11, [#allocation8]  }
  0x38   : > { %p34_p1 = scmp.ge.s32.totalorder %s33_s13, 2  ;;  %s36_s8 = sadd.s32 1, %s1173_s27 }
  0x39   : > { %s45_s12 = sadd.s32 1, %s1157_s23  ;;  %p52_p3 = scmp.ne.s32.totalorder %s1157_s23, %s1153_s22 }
  0x3a   : > { %s1664_s13 = smov (%p34_p1, %s33_s13), 0  ;;  %s1666_s8 = smov (!%p34_p1, %s36_s8), %s1173_s27 }
  0x3b   : > { %1626 = sst [smem:[#allocation17_spill]] %s1664_s13  ;;  %s41_s16 = ssub.s32 %s1169_s26, %s1664_s13 }
  0x3c   : > { %p1613_p4 = scmp.eq.s32.totalorder %s1177_s28, 0  ;;  %p38_p6 = scmp.ge.s32.totalorder %s1666_s8, 2 }
  0x3d   : > { %p1629_p12 = scmp.eq.s32.totalorder %s1281_s29, 3  ;;  %p1612_p0 = scmp.lt.s32.totalorder %s1177_s28, 4 }
  0x3e   : > { %p1348_p8 = por %p1613_p4, %p52_p3  ;;  %s1668_s8 = smov (%p38_p6, %s1666_s8), 0 }
  0x3f   : > { %1628 = sst [smem:[#allocation18_spill]] %s1668_s8  ;;  %s1356_s11 = ssub.s32 %s1173_s27, %s1668_s8 }
  0x40   : > { %s42_s18 = sor.u32 %s41_s16, %s1356_s11  ;;  %p1361_p13 = por %p1629_p12, %p52_p3 }
  0x41   : > { %p43_p10 = scmp.eq.s32.totalorder %s42_s18, 0  ;;  %s234_s14 = sand.u32 1, %s1157_s23  }
  0x42   : > { %s770_s15 = sshll.u32 %s234_s14, 2  ;;  %s771_s3 = sshll.u32 %s1173_s27, 1 }
  0x43   : > { %s1366_s10 = scalar_select %p43_p10, %s1157_s23, %s45_s12  }
  0x44   : > { %s243_s8 = sadd.s32 %s1169_s26, %s771_s3  ;;  %s238_s21 = scalar_lea.vmem [#allocation4], %s770_s15 }
  0x45   : > { %s772_s13 = sshll.u32 %s243_s8, 6  ;;  %s247_s5 = sshll.u32 %s238_s21, 4  ;;  %s1378_s5 = int_to_ptr.vmem [resolvable:$true] %s247_s5 }
  0x46   : > { %s1631_s0 = sld [smem:[#allocation19_spill]]  ;;  %p1384_p5 = pnand %p1612_p0, %p1348_p8 }
  0x47   : > { %s254_s3 = sand.u32 1, %s1177_s28   ;;  %s235_s21 = scalar_lea.sflag [#allocation5], %s234_s14 }
  0x48   : > { %p988_p9 = pneg %p1384_p5 }
  0x4c   : > { %s1376_s18 = scalar_lea.hbm %s1631_s0, %s772_s13  ;;  %s991_s17 = scalar_lea.hbm %s1631_s0, 256 }
  0x4d   : > { %s986_s8 = scalar_lea.hbm %s1376_s18, 64  ;;  %p992_p3 = scmp.lt.u32.totalorder %s1376_s18, %s1631_s0 }
  0x4e   : > { %p987_p7 = scmp.ne.s32.totalorder %s1376_s18, %s986_s8  ;;  %p993_p6 = scmp.lt.u32.totalorder %s991_s17, %s986_s8 }
  0x4f   : > { %p995_p10 = scmp.lt.u32.totalorder %s986_s8, %s1376_s18 }
  0x50   : > { %p989_p11 = pnand %p988_p9, %p987_p7  ;;  %p994_p8 = por %p993_p6, %p992_p3 }
  0x52   : > { %p990_p1 = pneg %p989_p11  ;;  %p996_p12 = por %p995_p10, %p994_p8 }
  0x54   : > { %p997_p0 = pnand %p996_p12, %p990_p1 }
  0x56   : > { %1000 = shalt.err (!%p997_p0)
}
  0x57   : > { %s1001_s14 = scalar_lea.vmem %s1378_s5, 64  ;;  %s1180_s4 = smov [#allocation4]  }
  0x58   : > { %p1002_p7 = scmp.ne.s32.totalorder %s1378_s5, %s1001_s14  ;;  %s1006_s13 = sshll.u32 %s1180_s4, 4  ;;  %s1007_s13 = int_to_ptr.vmem [resolvable:$false] %s1006_s13 }
  0x59   : > { %s1008_s15 = scalar_lea.vmem %s1007_s13, 128  ;;  %p1009_p2 = scmp.lt.s32.totalorder %s1378_s5, %s1007_s13 }
  0x5a   : > { %p1004_p11 = pnand %p1002_p7, %p988_p9  ;;  %p1010_p3 = scmp.lt.s32.totalorder %s1008_s15, %s1001_s14 }
  0x5c   : > { %p1005_p4 = pneg %p1004_p11  ;;  %p1011_p6 = por %p1010_p3, %p1009_p2 }
  0x5e   : > { %p1012_p8 = pnand %p1011_p6, %p1005_p4 }
  0x60   : > { %1015 = shalt.err (!%p1012_p8)
}
  0x61   : > { %840 = dma.hbm_to_vmem [thread:$0]  (!%p1384_p5), %s1376_s18, 64, %s1378_s5, %s235_s21  }
  0x62   : > { %s79_s8 = sadd.s32 1, %s1145_s20  ;;  %p86_p0 = scmp.ne.s32.totalorder %s1145_s20, %s1141_s19 }
  0x63   : > { %p1633_p2 = scmp.eq.s32.totalorder %s1356_s11, 0  ;;  %p1634_p4 = scmp.eq.s32.totalorder %s1177_s28, 0 }
  0x64   : > { %s256_s12 = sand.u32 1, %s1145_s20   ;;  %s1134_s16 = sshll.u32 %s1173_s27, 7 }
  0x65   : > { %s1420_s17 = scalar_select %p1633_p2, %s1145_s20, %s79_s8  }
  0x66   : > { %p88_p9 = por %p86_p0, %p1634_p4  ;;  %s773_s14 = sshll.u32 %s256_s12, 2 }
  0x67   : > { %s1429_s15 = scalar_lea.hbm %s1598_s1, %s1134_s16  ;;  %p1635_p1 = scmp.lt.s32.totalorder %s1177_s28, 4 }
  0x68   : > { %s258_s11 = scalar_lea.vmem [#allocation7], %s773_s14  ;;  %s255_s21 = scalar_lea.sflag [#allocation8], %s254_s3 }
  0x69   : > { %p1433_p5 = pnand %p1635_p1, %p88_p9  ;;  %s270_s18 = sshll.u32 %s258_s11, 4  ;;  %s1437_s18 = int_to_ptr.vmem [resolvable:$true] %s270_s18 }
  0x6a   : > { %s1016_s8 = scalar_lea.hbm %s1429_s15, 64  ;;  %s1021_s4 = scalar_lea.hbm %s1598_s1, 256 }
  0x6b   : > { %p1017_p10 = scmp.ne.s32.totalorder %s1429_s15, %s1016_s8  ;;  %p1018_p12 = pneg %p1433_p5 }
  0x6c   : > { %p1022_p3 = scmp.lt.u32.totalorder %s1429_s15, %s1598_s1  ;;  %p1023_p6 = scmp.lt.u32.totalorder %s1021_s4, %s1016_s8 }
  0x6d   : > { %p1019_p7 = pnand %p1018_p12, %p1017_p10  ;;  %p1025_p0 = scmp.lt.u32.totalorder %s1016_s8, %s1429_s15 }
  0x6e   : > { %p1024_p8 = por %p1023_p6, %p1022_p3 }
  0x6f   : > { %p1020_p11 = pneg %p1019_p7 }
  0x70   : > { %p1026_p2 = por %p1025_p0, %p1024_p8 }
  0x72   : > { %p1027_p4 = pnand %p1026_p2, %p1020_p11 }
  0x74   : > { %1030 = shalt.err (!%p1027_p4)
}
  0x75   : > { %s1031_s3 = scalar_lea.vmem %s1437_s18, 64  ;;  %s1181_s14 = smov [#allocation7]  }
  0x76   : > { %p1032_p9 = scmp.ne.s32.totalorder %s1437_s18, %s1031_s3  ;;  %s1036_s11 = sshll.u32 %s1181_s14, 4  ;;  %s1037_s11 = int_to_ptr.vmem [resolvable:$false] %s1036_s11 }
  0x77   : > { %s1038_s0 = scalar_lea.vmem %s1037_s11, 128  ;;  %p1039_p7 = scmp.lt.s32.totalorder %s1437_s18, %s1037_s11 }
  0x78   : > { %p1034_p1 = pnand %p1032_p9, %p1018_p12  ;;  %p1040_p3 = scmp.lt.s32.totalorder %s1038_s0, %s1031_s3 }
  0x7a   : > { %p1035_p10 = pneg %p1034_p1  ;;  %p1041_p6 = por %p1040_p3, %p1039_p7 }
  0x7c   : > { %p1042_p8 = pnand %p1041_p6, %p1035_p10 }
  0x7e   : > { %1045 = shalt.err (!%p1042_p8)
}
  0x7f   : > { %843 = dma.hbm_to_vmem [thread:$0]  (!%p1433_p5), %s1429_s15, 64, %s1437_s18, %s255_s21  }
  0x80   : > { %p1637_p11 = scmp.ne.s32.totalorder %s1623_s9, 0 }
  0x81   : > { %s1469_s8 = sand.u32 (!%p1637_p11), 1, %s1153_s22   ;;  %p1638_p12 = scmp.ne.s32.totalorder (!%p1637_p11), %s1619_s6, 0 }
  0x82   : > { %296 = sbr.rel (%p1637_p11) target bundleno = 569 (0x239), region = 40  ;;  %s778_s12 = sshll.u32 (!%p1637_p11), %s1469_s8, 2 }
  0x83   : > { %s299_s16 = scalar_lea.sflag (!%p1637_p11), [#allocation5], %s1469_s8  ;;  %s302_s4 = scalar_lea.vmem (!%p1637_p11), [#allocation4], %s778_s12 }
  0x89   : > { %1119 = dma.done.wait (%p1638_p12), %s299_s16, 64  }
  0x8a   : > { %1121 = vsyncadd (%p1638_p12), %s299_s16, 4294967232  ;;  %s307_s15 = sand.u32 1, %s1281_s29   ;;  %s309_s9 = sand.u32 1, %s1141_s19  }
  0x8b   : > { %s779_s5 = sshll.u32 %s309_s9, 2  ;;  %s308_s18 = scalar_lea.sflag [#allocation8], %s307_s15 }
  0x8c   : > { %s311_s21 = scalar_lea.vmem [#allocation7], %s779_s5  ;;  %p1639_p5 = scmp.ne.s32.totalorder %s1620_s7, 0 }
  0x8e   : > { %1123 = dma.done.wait (%p1639_p5), %s308_s18, 64  }
  0x8f   : > { %1125 = vsyncadd (%p1639_p5), %s308_s18, 4294967232  ;;  %p1640_p0 = scmp.eq.s32.totalorder %s1281_s29, 0 }
  0x91   : > { %1127 = dma.done.wait (%p1640_p0), [#allocation8], 128   ;;  %p1641_p2 = pmov %p1640_p0 }
  0x92   : > { %s781_s6 = sshll.u32 %s1469_s8, 3  ;;  %s361_s13 = sadd.s32 1, %s1161_s24  ;;  %v375_v0 = vld [vmem:[%s302_s4] sm:$0xf] }
  0x93   : > { %1129 = vsyncadd (%p1641_p2), [#allocation8], 4294967168  ;;  %p362_p4 = scmp.lt.s32.totalorder %s361_s13, 1  ;;  %p364_p9 = scmp.lt.s32.totalorder %s1165_s25, 1  ;;  %376 = vst [vmem:[#allocation2 + $0x4] sm:$0xf] %v375_v0 }
  0x94   : > { %s1494_s16 = scalar_lea.vmem [#allocation10], %s781_s6  ;;  %p787_p1 = scmp.le.s32.totalorder %s1161_s24, 0 }
  0x95   : > { %s1670_s13 = smov (!%p362_p4, %s361_s13), 1  ;;  %v381_v1 = vld [vmem:[%s311_s21] sm:$0xf] (!%p787_p1)  ;;  %vm382_vm0 = vcmask (!%p787_p1), 1044352  }
  0x96   : > { %s365_s3 = scalar_select %p364_p9, %s1165_s25, 1 }
  0x97   : > { %s1672_s13 = smov (!%p362_p4, %s1670_s13), 1  ;;  %380 = sbr.rel (%p787_p1) target bundleno = 158 (0x9e), region = 56 }
  0x98   : > { %s785_s14 = sshll.u32 %s365_s3, 1  ;;  %383 = vst.msk [vmem:[#allocation2] sm:$0xf] (!%p787_p1), %vm382_vm0, %v381_v1 }
  0x99   : > { %s369_s7 = sadd.s32 %s785_s14, %s1672_s13 }
  0x9a   : > { %s786_s11 = sshll.u32 %s369_s7, 2 }
  0x9b   : > { %s371_s29 = scalar_lea.vmem %s1599_s2, %s786_s11 }
  0x9e PF: > { %p788_p10 = scmp.ne.s32.totalorder %s1161_s24, 0 }
  0x9f   : > { %vm388_vm1 = vcmask (!%p788_p10), 1044352   ;;  %v1182_v2 = vmov (!%p788_p10), 0.0  }
  0xa0   : > { %387 = sbr.rel (%p788_p10) target bundleno = 167 (0xa7), region = 60  ;;  %389 = vst.msk [vmem:[#allocation2] sm:$0xf] (!%p788_p10), %vm388_vm1, %v1182_v2 }
  0xa7 PF: > { %p789_p7 = scmp.ge.s32.totalorder %s1161_s24, 1 }
  0xa8   : > { %v394_v3 = vld [vmem:[%s371_s29] sm:$0xf] (!%p789_p7)  ;;  %vm395_vm2 = vcmask (!%p789_p7), 125952  }
  0xa9   : > { %393 = sbr.rel (%p789_p7) target bundleno = 176 (0xb0), region = 64  ;;  %396 = vst.msk [vmem:[#allocation2 + $0x8] sm:$0xf] (!%p789_p7), %vm395_vm2, %v394_v3 }
  0xb0 PF: > { %p790_p3 = scmp.ne.s32.totalorder %s1161_s24, 1 }
  0xb1   : > { %vm401_vm3 = vcmask (!%p790_p3), 125952   ;;  %v1183_v4 = vmov (!%p790_p3), 0.0  }
  0xb2   : > { %400 = sbr.rel (%p790_p3) target bundleno = 185 (0xb9), region = 68  ;;  %402 = vst.msk [vmem:[#allocation2 + $0x8] sm:$0xf] (!%p790_p3), %vm401_vm3, %v1183_v4 }
  0xb9 PF: > { %v444_v5 = vld [vmem:[#allocation2] sm:$0xff]  ;;  %s1184_s4 = smov 15   ;;  %s1185_s15 = smov 17   ;;  %v1187_v9 = vmov 0.0|0.0   ;;  %vm1192_vm4 = vmmov 0   ;;  %v1193_v11 = vmov 0.0   ;;  %v403_v14 = vlaneseq }
  0xba   : > { %449 = vrot.lane.b32.xlu1 %v444_v5, %s1184_s4  ;;  %v448_v6 = vcombine.high %v444_v5, %v444_v5  ;;  %424 = vrot.lane.b32.xlu0 %v444_v5, %s1185_s15  ;;  %v470_v7 = vld [vmem:[#allocation2 + $0x4] sm:$0xf]  ;;  %s1186_s9 = smov 1   ;;  %s1188_s5 = smov 16   ;;  %v1195_v12 = vmov 0   ;;  %vm453_vm5 = vcmask 121856  }
  0xbb   : > { %471 = vst [vmem:[#allocation3 + $0x10] sm:$0xf] %v470_v7  ;;  %v472_v8 = vld [vmem:[#allocation2 + $0x4] sm:$0xff]  ;;  %817 = vmatprep.subr.bf16.mxu0 %v1187_v9  ;;  %s1189_s18 = smov 127   ;;  %s1190_s21 = smov 113   ;;  %814 = vmatprep.mubr.msk.f32.mxu0 %vm1192_vm4, %v1193_v11  ;;  %v404_v15 = vand.u32 127, %v403_v14 }
  0xbc   : > { %v474_v10 = vcombine.high %v472_v8, %v472_v8  ;;  %s1191_s6 = smov 112   ;;  %s1194_s13 = smov 111   ;;  %955 = vset.pattern.permute.xlu0 %v1195_v12  ;;  %vm428_vm6 = vcmask 138240   ;;  %vm465_vm9 = vcmask 7168   ;;  %vm440_vm10 = vcmask 130048   ;;  %v519_v56 = vld [vmem:[#allocation9] sm:$0xff] }
  0xbd   : > { %s1642_s7 = sld [smem:[#allocation21_spill]]  ;;  %v409_v16 = vand.u32 15, %v404_v15  ;;  %vm479_vm11 = vcmask 1039360   ;;  %vm491_vm12 = vcmask 924672   ;;  %vm503_vm13 = vcmask 916480   ;;  %s794_s11 = sshll.u32 %s1165_s25, 1 }
  0xbe   : > { %451 = vrot.lane.b32.xlu1 %v448_v6, %s1184_s4  ;;  %426 = vrot.lane.b32.xlu0 %v448_v6, %s1185_s15  ;;  %vm514_vm14 = vcmask 908288   ;;  %vm535_vm15 = vcmask 1043456   ;;  %vm531_vm0 = vcmask 293888   ;;  %s622_s0 = sadd.s32 %s1161_s24, %s794_s11  ;;  %s626_s29 = sshll.u32 %s1494_s16, 4  ;;  %s1535_s29 = int_to_ptr.vmem [resolvable:$true] %s626_s29 }
  0xbf   : > { %vm1505_vm7 = vcmp.ne.s32.totalorder %v409_v16, 15  ;;  %vm1509_vm8 = vcmp.ne.s32.totalorder %v409_v16, 0  ;;  %s795_s12 = sshll.u32 %s622_s0, 7  ;;  %s1046_s25 = scalar_lea.vmem %s1535_s29, 128 }
  0xc0   : > { %p1047_p6 = scmp.ne.s32.totalorder %s1535_s29, %s1046_s25  ;;  %s1196_s24 = smov [#allocation10]  }
  0xc2   : > { %463 = vrot.lane.b32.xlu1 %v448_v6, %s1186_s9  ;;  %461 = vrot.lane.b32.xlu0 %v444_v5, %s1186_s9  ;;  %s1647_s9 = sld [smem:[#allocation22_spill]]  ;;  %p1048_p8 = pnand %p1047_p6, %p1361_p13 }
  0xc3   : > { %v525_v13 = vld [vmem:[%s1642_s7] sm:$0xff] }
  0xc4   : > { %p1049_p11 = pneg %p1048_p8 }
  0xc6   : > { %438 = vrot.lane.b32.xlu1 %v448_v6, %s1188_s5  ;;  %436 = vrot.lane.b32.xlu0 %v444_v5, %s1188_s5 }
  0xc8   : > { %s1533_s5 = scalar_lea.hbm %s1647_s9, %s795_s12 }
  0xca   : > { %477 = vrot.lane.b32.xlu1 %v474_v10, %s1189_s18  ;;  %475 = vrot.lane.b32.xlu0 %v472_v8, %s1189_s18  ;;  %s611_s18 = scalar_lea.sflag [#allocation6], %s1469_s8 }
  0xce   : > { %489 = vrot.lane.b32.xlu1 %v474_v10, %s1190_s21  ;;  %487 = vrot.lane.b32.xlu0 %v472_v8, %s1190_s21  ;;  %s1050_s21 = sshll.u32 %s1196_s24, 4  ;;  %s1051_s21 = int_to_ptr.vmem [resolvable:$false] %s1050_s21 }
  0xcf   : > { %p1053_p12 = scmp.lt.s32.totalorder %s1535_s29, %s1051_s21 }
  0xd2   : > { %501 = vrot.lane.b32.xlu1 %v474_v10, %s1191_s6  ;;  %499 = vrot.lane.b32.xlu0 %v472_v8, %s1191_s6  ;;  %s1052_s6 = scalar_lea.vmem %s1051_s21, 256 }
  0xd3   : > { %p1054_p5 = scmp.lt.s32.totalorder %s1052_s6, %s1046_s25 }
  0xd5   : > { %p1055_p0 = por %p1054_p5, %p1053_p12 }
  0xd6   : > { %512 = vrot.lane.b32.xlu1 %v474_v10, %s1194_s13  ;;  %510 = vrot.lane.b32.xlu0 %v472_v8, %s1194_s13 }
  0xd7   : > { %p1056_p2 = pnand %p1055_p0, %p1049_p11 }
  0xda   : > { %528 = vperm.xlu0 %955, %v525_v13  }
 0x12c   : > { %v450_v17 = vpop.permute.xlu1 %449  ;;  %v425_v18 = vpop.permute.xlu0 %424 }
 0x130   : > { %v452_v21 = vpop.permute.xlu1 %451  ;;  %v427_v22 = vpop.permute.xlu0 %426 }
 0x131   : > { %v454_v23 = vsel %vm453_vm5, %v450_v17, %v452_v21  ;;  %v429_v24 = vsel %vm428_vm6, %v425_v18, %v427_v22 }
 0x132   : > { %v456_v25 = vsel %vm1505_vm7, %v454_v23, 0.0  ;;  %v431_v26 = vsel %vm1509_vm8, %v429_v24, 0.0 }
 0x133   : > { %457 = vst [vmem:[#allocation3 + $0x8] sm:$0xf] %v456_v25  ;;  %432 = vst [vmem:[#allocation3] sm:$0xf] %v431_v26 }
 0x134   : > { %v464_v27 = vpop.permute.xlu1 %463  ;;  %v462_v28 = vpop.permute.xlu0 %461 }
 0x135   : > { %v466_v29 = vsel %vm465_vm9, %v462_v28, %v464_v27 }
 0x136   : > { %v468_v30 = vsel %vm1509_vm8, %v466_v29, 0.0 }
 0x137   : > { %469 = vst [vmem:[#allocation3 + $0xc] sm:$0xf] %v468_v30 }
 0x138   : > { %v439_v31 = vpop.permute.xlu1 %438  ;;  %v437_v32 = vpop.permute.xlu0 %436 }
 0x139   : > { %v441_v33 = vsel %vm440_vm10, %v437_v32, %v439_v31 }
 0x13a   : > { %443 = vst [vmem:[#allocation3 + $0x4] sm:$0xf] %v441_v33 }
 0x13c   : > { %v478_v34 = vpop.permute.xlu1 %477  ;;  %v476_v35 = vpop.permute.xlu0 %475 }
 0x13d   : > { %v480_v36 = vsel %vm479_vm11, %v476_v35, %v478_v34 }
 0x13e   : > { %v482_v37 = vsel %vm1505_vm7, %v480_v36, 0.0  ;;  %v521_v42 = vld [vmem:[#allocation3 + $0x8] sm:$0xff] }
 0x13f   : > { %483 = vst [vmem:[#allocation3 + $0x14] sm:$0xf] %v482_v37 }
 0x140   : > { %v490_v38 = vpop.permute.xlu1 %489  ;;  %v488_v39 = vpop.permute.xlu0 %487 }
 0x141   : > { %v492_v40 = vsel %vm491_vm12, %v488_v39, %v490_v38  ;;  %v520_v41 = vld [vmem:[#allocation3] sm:$0xff] }
 0x142   : > { %v494_v43 = vsel %vm1509_vm8, %v492_v40, 0.0  ;;  %v818_v44 = vpack.c.bf16 %v521_v42, %v520_v41 }
 0x143   : > { %495 = vst [vmem:[#allocation3 + $0x18] sm:$0xf] %v494_v43 }
 0x144   : > { %v502_v45 = vpop.permute.xlu1 %501  ;;  %v500_v46 = vpop.permute.xlu0 %499  ;;  %819 = vmatpush3.bf16.msra.mxu0 %v818_v44 }
 0x145   : > { %v504_v47 = vsel %vm503_vm13, %v500_v46, %v502_v45  ;;  %820 = vmatprep.subr.bf16.mxu0 %v1187_v9 }
 0x146   : > { %506 = vst [vmem:[#allocation3 + $0x1c] sm:$0xf] %v504_v47  ;;  %v522_v52 = vld [vmem:[#allocation3 + $0x10] sm:$0xff] }
 0x148   : > { %v513_v48 = vpop.permute.xlu1 %512  ;;  %v511_v49 = vpop.permute.xlu0 %510 }
 0x149   : > { %v515_v50 = vsel %vm514_vm14, %v511_v49, %v513_v48 }
 0x14a   : > { %v517_v51 = vsel %vm1505_vm7, %v515_v50, 0.0 }
 0x14b   : > { %518 = vst [vmem:[#allocation3 + $0x20] sm:$0xf] %v517_v51 }
 0x14d   : > { %v523_v53 = vld [vmem:[#allocation3 + $0x18] sm:$0xff] }
 0x14e   : > { %v821_v54 = vpack.c.bf16 %v523_v53, %v522_v52 }
 0x150   : > { %822 = vmatpush3.bf16.msra.mxu0 %v821_v54 }
 0x151   : > { %812 = vmatprep.subr.mxu0 %v1193_v11 }
 0x152   : > { %v524_v55 = vld [vmem:[#allocation3 + $0x20] sm:$0xf] }
 0x154   : > { %813 = vmatpush3.msk.msra.mxu0 %vm535_vm15, %v524_v55 }
 0x155   : > { %815 = vmatmul.mubr.msk.f32.vlgmr.msra.gmra.mrb[0].mxu0 %vm531_vm0, %v519_v56 }
 0x159   : > { %v529_v57 = vpop.permute.xlu0 %528 }
 0x228   : > { %v605_v58 = vpop.f32.mrb[0].mxu0 }
 0x229   : > { %v606_v59 = vadd.f32 %v605_v58, %v529_v57  ;;  %v816_v60 = vpop.f32.mrb[1].mxu0 }
 0x22b   : > { %609 = vst [vmem:[%s1494_s16] sm:$0xff] %v606_v59 }
 0x22c   : > { %1059 = shalt.err (!%p1056_p2)
}
 0x22d   : > { %s1060_s8 = scalar_lea.hbm %s1533_s5, 128  ;;  %s1064_s3 = scalar_lea.hbm %s1647_s9, 512 }
 0x22e   : > { %p1061_p4 = scmp.ne.s32.totalorder %s1533_s5, %s1060_s8  ;;  %p1065_p10 = scmp.lt.u32.totalorder %s1533_s5, %s1647_s9 }
 0x22f   : > { %p1066_p7 = scmp.lt.u32.totalorder %s1064_s3, %s1060_s8  ;;  %p1068_p6 = scmp.lt.u32.totalorder %s1060_s8, %s1533_s5 }
 0x230   : > { %p1062_p9 = pnand %p1061_p4, %p1361_p13 }
 0x231   : > { %p1067_p3 = por %p1066_p7, %p1065_p10 }
 0x232   : > { %p1063_p1 = pneg %p1062_p9 }
 0x233   : > { %p1069_p8 = por %p1068_p6, %p1067_p3 }
 0x235   : > { %p1070_p11 = pnand %p1069_p8, %p1063_p1 }
 0x237   : > { %1073 = shalt.err (!%p1070_p11)
}
 0x238   : > { %831 = dma.vmem_to_hbm [thread:$0]  (%p1361_p13), %s1535_s29, 128, %s1533_s5, %s611_s18  }
 0x239 PF: > { %s1648_s11 = sld [smem:[#allocation15_spill]]  ;;  %s1649_s0 = sld [smem:[#allocation16_spill]] }
 0x23a   : > { %p851_p12 = scmp.ge.s32.totalorder %s1177_s28, 2 }
 0x23f   : > { %s638_s12 = sand.u32 1, %s1648_s11   ;;  %p1650_p5 = scmp.ne.s32.totalorder %s1649_s0, 0 }
 0x240   : > { %s639_s4 = scalar_lea.sflag [#allocation6], %s638_s12 }
 0x241   : > { %p845_p0 = pnand %p851_p12, %p1650_p5 }
 0x243   : > { %1131 = dma.done.wait (!%p845_p0), %s639_s4, 128  }
 0x244   : > { %1133 = vsyncadd (!%p845_p0), %s639_s4, 4294967168  ;;  %s24_s28 = sadd.s32 1, %s1177_s28   ;;  %s1651_s30 = sld [smem:[#allocation17_spill]] }
 0x245   : > { %p21_p2 = scmp.ge.s32.totalorder %s24_s28, 6   ;;  %s1652_s29 = sld [smem:[#allocation18_spill]] }
 0x246   : > { %s1653_s18 = smov %s1141_s19  ;;  %s1654_s19 = smov %s1145_s20 }
 0x247   : > { %s1655_s20 = smov %s1420_s17  ;;  %s1656_s21 = smov %s1153_s22 }
 0x248   : > { %s1657_s22 = smov %s1157_s23  ;;  %s1658_s23 = smov %s1366_s10 }
 0x249   : > { %s1659_s24 = smov %s1169_s26  ;;  %s1660_s25 = smov %s1173_s27 }
 0x24a   : > { %s1661_s26 = smov %s1651_s30  ;;  %23 = sbr.rel (!%p21_p2) target bundleno = 16 (0x10), region = 121 }
 0x24b   : > { %s1662_s27 = smov %s1652_s29 }
 0x251   :  { %644 = vsyncpa [#allocation5], 1 }
 0x252   :  { %646 = vsyncpa [#allocation5 + $0x1], 1 }
 0x253   :  { %647 = vsyncpa [#allocation8], 1 }
 0x254   :  { %649 = vsyncpa [#allocation8 + $0x1], 1 }
 0x255   :  { %650 = vsyncpa [#allocation6], 1 }
 0x256   :  { %652 = vsyncpa [#allocation6 + $0x1], 1 }

</bundles_post_ra>
